<compile_context>
chip_gen: v7x
topology: tpu7x:2x2x1
jax: 0.10.0
libtpu: 0.0.40
codegen_flags: <defaults>
</compile_context>

<pallas_src>
import jax
import jax.numpy as jnp
from jax import lax
from jax.experimental import pallas as pl
from jax.experimental.pallas import tpu as pltpu


def _round_up(x, m):
    return ((x + m - 1) // m) * m


def _choose_tile(B, batch_tile):
    """Lane-dense batch tile: multiple of 128, scales with B (target 8192),
    and <= ceil(B/2) (rounded to 128) so the grid has >=2 steps when possible
    (v7x megacore)."""
    target = 8192 if batch_tile is None else batch_tile
    target = max(128, _round_up(target, 128))
    cap_b = _round_up(B, 128)                      # never exceed padded batch
    half = max(128, _round_up(pl.cdiv(B, 2), 128))  # >=2 tiles whenever B > 128
    return min(target, cap_b, half)


def _make_mlp_kernel(num_inputs):
    def mlp_kernel(x_ref,
                   w1_ref, b1_ref,
                   w2_ref, b2_ref,
                   w3_ref, b3_ref,
                   w4_ref, b4_ref,
                   o_ref):
        if num_inputs == 1:
            # x_ref: (1, tb) lane-dense.  K=1 matmul -> VPU broadcast
            # outer-product: (64, 1) * (1, tb) -> (64, tb).
            h = w1_ref[...] * x_ref[...]
        else:
            # x_ref: (tb, ni) natural layout (no wrapper-side x.T / extra HBM
            # pass).  Contract over ni on the MXU, producing batch-on-lanes
            # (64, tb) directly.
            h = lax.dot_general(
                w1_ref[...], x_ref[...],
                dimension_numbers=(((1,), (1,)), ((), ())),
                preferred_element_type=jnp.float32)
        h = jnp.maximum(h + b1_ref[...], 0.0)
        h = jnp.maximum(
            jnp.dot(w2_ref[...], h, preferred_element_type=jnp.float32) + b2_ref[...],
            0.0)
        h = jnp.maximum(
            jnp.dot(w3_ref[...], h, preferred_element_type=jnp.float32) + b3_ref[...],
            0.0)
        # Degenerate N=1 matmul -> VPU multiply + XLU sublane reduction.
        # Result (1, tb) is lane-dense and feeds an unmasked full-width store.
        o = jnp.sum(w4_ref[...] * h, axis=0, keepdims=True) + b4_ref[...]
        o_ref[...] = o.astype(o_ref.dtype)
    return mlp_kernel


def mlp_regressor_forward(x, params, *, batch_tile=None):
    """x: (B, num_inputs) f32.  params in PyTorch nn.Linear layout:
       w{i}: (out_features, in_features), b{i}: (out_features,).
       Returns (B, 1) f32."""
    B, num_inputs = x.shape

    # Kernel-side layouts: weights stay (out, in) (PyTorch layout), biases
    # become (out, 1) columns (broadcast over the lane/batch axis), and the
    # final (1, 32) weight becomes a (32, 1) column for the sublane reduction.
    w1, w2, w3 = params["w1"], params["w2"], params["w3"]
    w4c = params["w4"].T                      # (32, 1)
    b1 = params["b1"].reshape(-1, 1)
    b2 = params["b2"].reshape(-1, 1)
    b3 = params["b3"].reshape(-1, 1)
    b4 = params["b4"].reshape(1, 1)

    tb = _choose_tile(B, batch_tile)
    grid = (pl.cdiv(B, tb),)

    if num_inputs == 1:
        # (B, 1) and (1, B) share the same row-major layout -> free bitcast,
        # and the x tile is lane-dense.
        x_in = x.reshape(1, B)
        x_spec = pl.BlockSpec((1, tb), lambda i: (0, i))
    else:
        # Natural layout; the layer-1 contraction handles the orientation
        # in-kernel, avoiding a wrapper-level x.T (extra HBM pass over x).
        x_in = x
        x_spec = pl.BlockSpec((tb, num_inputs), lambda i: (i, 0))

    def resident(arr):
        # Small weights/biases: whole array resident in VMEM for every tile.
        return pl.BlockSpec(arr.shape, lambda i: (0, 0))

    flops = 2 * B * (num_inputs * 64 + 64 * 64 + 64 * 32 + 32)
    param_elems = sum(int(p.size) for p in (w1, w2, w3, w4c, b1, b2, b3, b4))
    bytes_accessed = 4 * (B * (num_inputs + 1) + param_elems)

    out = pl.pallas_call(
        _make_mlp_kernel(num_inputs),
        out_shape=jax.ShapeDtypeStruct((1, B), jnp.float32),
        grid_spec=pltpu.PrefetchScalarGridSpec(
            num_scalar_prefetch=0,
            grid=grid,
            in_specs=[
                x_spec,
                resident(w1), resident(b1),
                resident(w2), resident(b2),
                resident(w3), resident(b3),
                resident(w4c), resident(b4),
            ],
            out_specs=pl.BlockSpec((1, tb), lambda i: (0, i)),   # lane-dense output
        ),
        compiler_params=pltpu.CompilerParams(
            dimension_semantics=("parallel",),
            # Headroom for large batch tiles against v5e's 16 MiB scoped
            # default; safe on every generation (<= physical VMEM everywhere).
            vmem_limit_bytes=32 * 1024 * 1024),
        cost_estimate=pl.CostEstimate(
            flops=flops, transcendentals=0, bytes_accessed=bytes_accessed),
    )(x_in, w1, b1, w2, b2, w3, b3, w4c, b4)

    # Match the PyTorch module's (B, 1) output.  Callers that can consume the
    # lane-dense (1, B) form should use `out` directly to avoid a relayout.
    return out.reshape(B, 1)


def init_params(key, num_inputs):
    """Deterministic init mimicking nn.Linear: weight (out, in), bias (out,),
    both U(-1/sqrt(fan_in), 1/sqrt(fan_in))."""
    dims = [(num_inputs, 64), (64, 64), (64, 32), (32, 1)]
    params = {}
    keys = jax.random.split(key, 2 * len(dims))
    for idx, (fan_in, fan_out) in enumerate(dims):
        bound = 1.0 / (fan_in ** 0.5)
        w = jax.random.uniform(keys[2 * idx], (fan_out, fan_in),
                               minval=-bound, maxval=bound, dtype=jnp.float32)
        b = jax.random.uniform(keys[2 * idx + 1], (fan_out,),
                               minval=-bound, maxval=bound, dtype=jnp.float32)
        params[f"w{idx + 1}"] = w
        params[f"b{idx + 1}"] = b
    return params


def reference_forward(x, params):
    """Plain-JAX reference in PyTorch orientation: y = x @ W.T + b."""
    h = jnp.maximum(x @ params["w1"].T + params["b1"], 0.0)
    h = jnp.maximum(h @ params["w2"].T + params["b2"], 0.0)
    h = jnp.maximum(h @ params["w3"].T + params["b3"], 0.0)
    return h @ params["w4"].T + params["b4"]


if __name__ == "__main__":
    key = jax.random.PRNGKey(0)
    k_params, k_x, k_params3, k_x3 = jax.random.split(key, 4)

    # Parabola regression: scalar x -> scalar y.
    num_inputs = 1
    batch = 256            # -> tb=128, grid=(2,): exercises the >=2-tile path

    params = init_params(k_params, num_inputs)
    x = jax.random.uniform(k_x, (batch, num_inputs),
                           minval=-2.0, maxval=2.0, dtype=jnp.float32)

    out = jax.block_until_ready(mlp_regressor_forward(x, params))
    ref = reference_forward(x, params)
    assert out.shape == (batch, 1)
    assert jnp.allclose(out, ref, atol=1e-4, rtol=1e-4), "mismatch vs reference"

    # Ragged batch (exercises the masked edge tile / padded lanes).
    x2 = x[:200]
    out2 = jax.block_until_ready(mlp_regressor_forward(x2, params))
    ref2 = reference_forward(x2, params)
    assert out2.shape == (200, 1)
    assert jnp.allclose(out2, ref2, atol=1e-4, rtol=1e-4), "mismatch (ragged batch)"

    # num_inputs > 1 path: natural-layout x block, no wrapper-side transpose.
    ni3 = 4
    params3 = init_params(k_params3, ni3)
    x3 = jax.random.uniform(k_x3, (384, ni3),
                            minval=-2.0, maxval=2.0, dtype=jnp.float32)
    out3 = jax.block_until_ready(mlp_regressor_forward(x3, params3))
    ref3 = reference_forward(x3, params3)
    assert out3.shape == (384, 1)
    assert jnp.allclose(out3, ref3, atol=1e-4, rtol=1e-4), "mismatch (num_inputs>1)"

    print("KERNEL_OK")
</pallas_src>

<mosaic_0001>
module attributes {stable_mosaic.version = 11 : i64} {
  func.func @mlp_kernel(%arg0: i32, %arg1: memref<1x128xf32, #tpu.memory_space<vmem>>, %arg2: memref<64x1xf32, #tpu.memory_space<vmem>>, %arg3: memref<64x1xf32, #tpu.memory_space<vmem>>, %arg4: memref<64x64xf32, #tpu.memory_space<vmem>>, %arg5: memref<64x1xf32, #tpu.memory_space<vmem>>, %arg6: memref<32x64xf32, #tpu.memory_space<vmem>>, %arg7: memref<32x1xf32, #tpu.memory_space<vmem>>, %arg8: memref<32x1xf32, #tpu.memory_space<vmem>>, %arg9: memref<1x1xf32, #tpu.memory_space<vmem>>, %arg10: memref<1x128xf32, #tpu.memory_space<vmem>>) attributes {dimension_semantics = [#tpu.dimension_semantics<parallel>], iteration_bounds = array<i64: 2>, scalar_prefetch = 0 : i64, scratch_operands = 0 : i64, tpu.core_type = #tpu.core_type<tc>, window_params = [{transform_indices = @transform_0, window_bounds = array<i64: 1, 128>}, {pipeline_mode = #tpu.pipeline_mode<synchronous>, transform_indices = @transform_1, window_bounds = array<i64: 64, 1>}, {pipeline_mode = #tpu.pipeline_mode<synchronous>, transform_indices = @transform_2, window_bounds = array<i64: 64, 1>}, {pipeline_mode = #tpu.pipeline_mode<synchronous>, transform_indices = @transform_3, window_bounds = array<i64: 64, 64>}, {pipeline_mode = #tpu.pipeline_mode<synchronous>, transform_indices = @transform_4, window_bounds = array<i64: 64, 1>}, {pipeline_mode = #tpu.pipeline_mode<synchronous>, transform_indices = @transform_5, window_bounds = array<i64: 32, 64>}, {pipeline_mode = #tpu.pipeline_mode<synchronous>, transform_indices = @transform_6, window_bounds = array<i64: 32, 1>}, {pipeline_mode = #tpu.pipeline_mode<synchronous>, transform_indices = @transform_7, window_bounds = array<i64: 32, 1>}, {pipeline_mode = #tpu.pipeline_mode<synchronous>, transform_indices = @transform_8, window_bounds = array<i64: 1, 1>}, {transform_indices = @transform_9, window_bounds = array<i64: 1, 128>}]} {
    %c0 = arith.constant 0 : index
    %c0_0 = arith.constant 0 : index
    %0 = vector.load %arg2[%c0, %c0_0] : memref<64x1xf32, #tpu.memory_space<vmem>>, vector<64x1xf32>
    %c0_1 = arith.constant 0 : index
    %c0_2 = arith.constant 0 : index
    %1 = vector.load %arg1[%c0_1, %c0_2] : memref<1x128xf32, #tpu.memory_space<vmem>>, vector<1x128xf32>
    %2 = vector.broadcast %0 : vector<64x1xf32> to vector<64x128xf32>
    %3 = vector.broadcast %1 : vector<1x128xf32> to vector<64x128xf32>
    %4 = arith.mulf %2, %3 : vector<64x128xf32>
    %c0_3 = arith.constant 0 : index
    %c0_4 = arith.constant 0 : index
    %5 = vector.load %arg3[%c0_3, %c0_4] : memref<64x1xf32, #tpu.memory_space<vmem>>, vector<64x1xf32>
    %6 = vector.broadcast %5 : vector<64x1xf32> to vector<64x128xf32>
    %7 = arith.addf %4, %6 : vector<64x128xf32>
    %cst = arith.constant 0.000000e+00 : f32
    %8 = vector.broadcast %cst : f32 to vector<64x128xf32>
    %9 = arith.maximumf %7, %8 : vector<64x128xf32>
    %c0_5 = arith.constant 0 : index
    %c0_6 = arith.constant 0 : index
    %10 = vector.load %arg4[%c0_5, %c0_6] : memref<64x64xf32, #tpu.memory_space<vmem>>, vector<64x64xf32>
    %cst_7 = arith.constant dense<0.000000e+00> : vector<64x128xf32>
    %11 = tpu.matmul %10, %9, %cst_7 {dimension_numbers = #tpu.dot_dimension_numbers<[1], [0], [0], [1], [0, 0, 1, 1], [], []>} : vector<64x64xf32>, vector<64x128xf32>, vector<64x128xf32> -> vector<64x128xf32>
    %c0_8 = arith.constant 0 : index
    %c0_9 = arith.constant 0 : index
    %12 = vector.load %arg5[%c0_8, %c0_9] : memref<64x1xf32, #tpu.memory_space<vmem>>, vector<64x1xf32>
    %13 = vector.broadcast %12 : vector<64x1xf32> to vector<64x128xf32>
    %14 = arith.addf %11, %13 : vector<64x128xf32>
    %cst_10 = arith.constant 0.000000e+00 : f32
    %15 = vector.broadcast %cst_10 : f32 to vector<64x128xf32>
    %16 = arith.maximumf %14, %15 : vector<64x128xf32>
    %c0_11 = arith.constant 0 : index
    %c0_12 = arith.constant 0 : index
    %17 = vector.load %arg6[%c0_11, %c0_12] : memref<32x64xf32, #tpu.memory_space<vmem>>, vector<32x64xf32>
    %cst_13 = arith.constant dense<0.000000e+00> : vector<32x128xf32>
    %18 = tpu.matmul %17, %16, %cst_13 {dimension_numbers = #tpu.dot_dimension_numbers<[1], [0], [0], [1], [0, 0, 1, 1], [], []>} : vector<32x64xf32>, vector<64x128xf32>, vector<32x128xf32> -> vector<32x128xf32>
    %c0_14 = arith.constant 0 : index
    %c0_15 = arith.constant 0 : index
    %19 = vector.load %arg7[%c0_14, %c0_15] : memref<32x1xf32, #tpu.memory_space<vmem>>, vector<32x1xf32>
    %20 = vector.broadcast %19 : vector<32x1xf32> to vector<32x128xf32>
    %21 = arith.addf %18, %20 : vector<32x128xf32>
    %cst_16 = arith.constant 0.000000e+00 : f32
    %22 = vector.broadcast %cst_16 : f32 to vector<32x128xf32>
    %23 = arith.maximumf %21, %22 : vector<32x128xf32>
    %c0_17 = arith.constant 0 : index
    %c0_18 = arith.constant 0 : index
    %24 = vector.load %arg8[%c0_17, %c0_18] : memref<32x1xf32, #tpu.memory_space<vmem>>, vector<32x1xf32>
    %25 = vector.broadcast %24 : vector<32x1xf32> to vector<32x128xf32>
    %26 = arith.mulf %25, %23 : vector<32x128xf32>
    %cst_19 = arith.constant dense<0.000000e+00> : vector<128xf32>
    %27 = vector.multi_reduction <add>, %26, %cst_19 [0] : vector<32x128xf32> to vector<128xf32>
    %28 = vector.shape_cast %27 : vector<128xf32> to vector<1x128xf32>
    %c0_20 = arith.constant 0 : index
    %c0_21 = arith.constant 0 : index
    %29 = vector.load %arg9[%c0_20, %c0_21] : memref<1x1xf32, #tpu.memory_space<vmem>>, vector<1x1xf32>
    %30 = vector.broadcast %29 : vector<1x1xf32> to vector<1x128xf32>
    %31 = arith.addf %28, %30 : vector<1x128xf32>
    %c0_22 = arith.constant 0 : index
    %c0_23 = arith.constant 0 : index
    %32 = vector.load %arg10[%c0_22, %c0_23] : memref<1x128xf32, #tpu.memory_space<vmem>>, vector<1x128xf32>
    tpu.vector_store %arg10[%c0_22, %c0_23], %31 {strides = array<i32>} : memref<1x128xf32, #tpu.memory_space<vmem>>, vector<1x128xf32>,
    return
  }
  func.func @transform_0(%arg0: i32) -> (i32, i32) {
    %c0_i32 = arith.constant 0 : i32
    %c0_i32_0 = arith.constant 0 : i32
    return %c0_i32, %arg0 : i32, i32
  }
  func.func @transform_1(%arg0: i32) -> (i32, i32) {
    %c0_i32 = arith.constant 0 : i32
    %c0_i32_0 = arith.constant 0 : i32
    %c0_i32_1 = arith.constant 0 : i32
    return %c0_i32, %c0_i32_0 : i32, i32
  }
  func.func @transform_2(%arg0: i32) -> (i32, i32) {
    %c0_i32 = arith.constant 0 : i32
    %c0_i32_0 = arith.constant 0 : i32
    %c0_i32_1 = arith.constant 0 : i32
    return %c0_i32, %c0_i32_0 : i32, i32
  }
  func.func @transform_3(%arg0: i32) -> (i32, i32) {
    %c0_i32 = arith.constant 0 : i32
    %c0_i32_0 = arith.constant 0 : i32
    %c0_i32_1 = arith.constant 0 : i32
    return %c0_i32, %c0_i32_0 : i32, i32
  }
  func.func @transform_4(%arg0: i32) -> (i32, i32) {
    %c0_i32 = arith.constant 0 : i32
    %c0_i32_0 = arith.constant 0 : i32
    %c0_i32_1 = arith.constant 0 : i32
    return %c0_i32, %c0_i32_0 : i32, i32
  }
  func.func @transform_5(%arg0: i32) -> (i32, i32) {
    %c0_i32 = arith.constant 0 : i32
    %c0_i32_0 = arith.constant 0 : i32
    %c0_i32_1 = arith.constant 0 : i32
    return %c0_i32, %c0_i32_0 : i32, i32
  }
  func.func @transform_6(%arg0: i32) -> (i32, i32) {
    %c0_i32 = arith.constant 0 : i32
    %c0_i32_0 = arith.constant 0 : i32
    %c0_i32_1 = arith.constant 0 : i32
    return %c0_i32, %c0_i32_0 : i32, i32
  }
  func.func @transform_7(%arg0: i32) -> (i32, i32) {
    %c0_i32 = arith.constant 0 : i32
    %c0_i32_0 = arith.constant 0 : i32
    %c0_i32_1 = arith.constant 0 : i32
    return %c0_i32, %c0_i32_0 : i32, i32
  }
  func.func @transform_8(%arg0: i32) -> (i32, i32) {
    %c0_i32 = arith.constant 0 : i32
    %c0_i32_0 = arith.constant 0 : i32
    %c0_i32_1 = arith.constant 0 : i32
    return %c0_i32, %c0_i32_0 : i32, i32
  }
  func.func @transform_9(%arg0: i32) -> (i32, i32) {
    %c0_i32 = arith.constant 0 : i32
    %c0_i32_0 = arith.constant 0 : i32
    return %c0_i32, %arg0 : i32, i32
  }
}

</mosaic_0001>

<bundles_post_ra>
// kernel: tpu_custom_call.1
= control target key start
LH: loop header
LB: loop body
LE: loop exit
PB: predicated region body
PF: predicated region fallthrough
CT: control target
= control target key end

     0   :  { %s1425_s0 = inlined_call_operand.vmem [shape: f32[1,256], index: 0, kind: input, shape index: {}]   ;;  %s1426_s1 = inlined_call_operand.vmem [shape: f32[64,1], index: 1, kind: input, shape index: {}]   ;;  %s1427_s2 = inlined_call_operand.vmem [shape: f32[64,1], index: 2, kind: input, shape index: {}]   ;;  %s1428_s3 = inlined_call_operand.vmem [shape: f32[64,64], index: 3, kind: input, shape index: {}]   ;;  %s1429_s4 = inlined_call_operand.vmem [shape: f32[64,1], index: 4, kind: input, shape index: {}]   ;;  %s1430_s5 = inlined_call_operand.vmem [shape: f32[32,64], index: 5, kind: input, shape index: {}]   ;;  %s1431_s6 = inlined_call_operand.vmem [shape: f32[32,1], index: 6, kind: input, shape index: {}]   ;;  %s1432_s7 = inlined_call_operand.vmem [shape: f32[32,1], index: 7, kind: input, shape index: {}]   ;;  %s1433_s8 = inlined_call_operand.<no memory space> [shape: f32[1,1], index: 8, kind: input, shape index: {}]   ;;  %s1434_s9 = inlined_call_operand.hbm [shape: f32[1,256], index: 9, kind: output, shape index: {}]  }
   0x1   :  { %v14_v0 = vstv %s1433_s8 }
   0x2   :  { %15 = vst [vmem:[#allocation2] sm:$0x1] %v14_v0 }
   0x3   :  { %16 = vsyncpa [#allocation4], 0 }
   0x4   :  { %18 = vsyncpa [#allocation4 + $0x1], 0  ;;  %s1181_s11 = smov 0   ;;  %s1183_s12 = smov 0  }
   0x5   :  { %s1185_s13 = smov 0   ;;  %s1187_s14 = smov 0  }
   0x6 LB: > { %s1202_s8 = sadd.s32 4294967295, %s1124_s14   ;;  %s890_s15 = sadd.s32 4294967294, %s1124_s14   ;;  %s1124_s14 = sphi %s1187_s14, %s1440_s14   ;;  %s1120_s13 = sphi %s1185_s13, %s1439_s13   ;;  %s1116_s12 = sphi %s1183_s12, %s1438_s12   ;;  %s1112_s11 = sphi %s1181_s11, %s1437_s11  }
   0x7   : > { %s1206_s16 = sadd.s32 1, %s1124_s14   ;;  %s225_s17 = sadd.s32 1, %s1120_s13 }
   0x8   : > { %s222_s18 = ssub.s32 %s1124_s14, %s1206_s16  ;;  %p235_p0 = scmp.ne.s32.totalorder %s1120_s13, %s1116_s12 }
   0x9   : > { %p223_p1 = scmp.eq.s32.totalorder %s222_s18, 0  ;;  %p236_p2 = scmp.eq.s32.totalorder %s1202_s8, 1 }
   0xa   : > { %p241_p3 = scmp.ne.s32.totalorder %s1116_s12, %s1112_s11  ;;  %p242_p4 = scmp.eq.s32.totalorder %s890_s15, 1 }
   0xb   : > { %s1217_s19 = scalar_select %p223_p1, %s1120_s13, %s225_s17  }
   0xc   : > { %p1219_p5 = por %p236_p2, %p235_p0  ;;  %p1223_p6 = por %p242_p4, %p241_p3 }
   0xd   : > { %p893_p7 = scmp.ge.s32.totalorder %s1124_s14, 1  ;;  %p290_p8 = scmp.lt.s32.totalorder %s1124_s14, 3 }
   0xf   : > { %p291_p9 = pnand %p893_p7, %p290_p8 }
  0x10   : > { %v389_v1 = vld [vmem:[%s1427_s2] sm:$0xff] (!%p291_p9)  ;;  %v1126_v3 = vmov (!%p291_p9), 0   ;;  %v390_v4 = vld [vmem:[%s1427_s2 + $0x8] sm:$0xff] (!%p291_p9)  ;;  %v329_v6 = vld [vmem:[%s1426_s1 + $0x18] sm:$0xff] (!%p291_p9)  ;;  %vm509_vm0 = vcmask (!%p291_p9), 523264   ;;  %p323_p10 = scmp.lt.s32.totalorder (!%p291_p9), %s1202_s8, 1 }
  0x11   : > { %294 = sbr.rel (%p291_p9) target bundleno = 674 (0x2a2), region = 56  ;;  %v326_v2 = vld [vmem:[%s1426_s1] sm:$0xff] (!%p291_p9)  ;;  %1061 = vset.pattern.permute.xlu1 (!%p291_p9), %v1126_v3  ;;  %1060 = vset.pattern.permute.xlu0 (!%p291_p9), %v1126_v3  ;;  %v327_v5 = vld [vmem:[%s1426_s1 + $0x8] sm:$0xff] (!%p291_p9)  ;;  %v328_v7 = vld [vmem:[%s1426_s1 + $0x10] sm:$0xff] (!%p291_p9)  ;;  %s907_s24 = sshll.u32 (!%p291_p9), %s1202_s8, 4 }
  0x12   : > { %399 = vperm.xlu1 (!%p291_p9), %1061, %v389_v1   ;;  %337 = vperm.xlu0 (!%p291_p9), %1060, %v326_v2   ;;  %v392_v8 = vld [vmem:[%s1427_s2 + $0x18] sm:$0xff] (!%p291_p9)  ;;  %v391_v9 = vld [vmem:[%s1427_s2 + $0x10] sm:$0xff] (!%p291_p9)  ;;  %v331_v10 = vld [vmem:[%s1426_s1 + $0x28] sm:$0xff] (!%p291_p9)  ;;  %s1383_s29 = scalar_lea.hbm (!%p291_p9), %s1434_s9, %s907_s24 }
  0x13   : > { %v330_v11 = vld [vmem:[%s1426_s1 + $0x20] sm:$0xff] (!%p291_p9)  ;;  %v394_v12 = vld [vmem:[%s1427_s2 + $0x28] sm:$0xff] (!%p291_p9)  ;;  %v333_v14 = vld [vmem:[%s1426_s1 + $0x38] sm:$0xff] (!%p291_p9) }
  0x14   : > { %v393_v13 = vld [vmem:[%s1427_s2 + $0x20] sm:$0xff] (!%p291_p9)  ;;  %v332_v15 = vld [vmem:[%s1426_s1 + $0x30] sm:$0xff] (!%p291_p9)  ;;  %v396_v16 = vld [vmem:[%s1427_s2 + $0x38] sm:$0xff] (!%p291_p9) }
  0x15   : > { %v395_v17 = vld [vmem:[%s1427_s2 + $0x30] sm:$0xff] (!%p291_p9)  ;;  %v462_v18 = vld [vmem:[%s1429_s4 + $0x8] sm:$0xff] (!%p291_p9)  ;;  %v461_v19 = vld [vmem:[%s1429_s4] sm:$0xff] (!%p291_p9) }
  0x16   : > { %404 = vperm.xlu1 (!%p291_p9), %1061, %v390_v4   ;;  %342 = vperm.xlu0 (!%p291_p9), %1060, %v327_v5   ;;  %v464_v20 = vld [vmem:[%s1429_s4 + $0x18] sm:$0xff] (!%p291_p9)  ;;  %v463_v21 = vld [vmem:[%s1429_s4 + $0x10] sm:$0xff] (!%p291_p9)  ;;  %v453_v22 = vld [vmem:[%s1428_s3] sm:$0xff] (!%p291_p9) }
  0x17   : > { %v466_v23 = vld [vmem:[%s1429_s4 + $0x28] sm:$0xff] (!%p291_p9)  ;;  %v465_v24 = vld [vmem:[%s1429_s4 + $0x20] sm:$0xff] (!%p291_p9)  ;;  %954 = vmatprep.mubr.msk.f32.mxu0 (!%p291_p9), %vm509_vm0, %v453_v22  ;;  %v468_v25 = vld [vmem:[%s1429_s4 + $0x38] sm:$0xff] (!%p291_p9) }
  0x18   : > { %v467_v26 = vld [vmem:[%s1429_s4 + $0x30] sm:$0xff]  ;;  %v652_v27 = vld [vmem:[%s1431_s6 + $0x8] sm:$0xff]  ;;  %v651_v28 = vld [vmem:[%s1431_s6] sm:$0xff]  ;;  %s324_s23 = scalar_select %p323_p10, %s1202_s8, 1 }
  0x19   : > { %v654_v29 = vld [vmem:[%s1431_s6 + $0x18] sm:$0xff]  ;;  %v653_v30 = vld [vmem:[%s1431_s6 + $0x10] sm:$0xff]  ;;  %v777_v31 = vld [vmem:[%s1432_s7 + $0x8] sm:$0xff]  ;;  %s1127_s8 = smov [#allocation3]  }
  0x1a   : > { %352 = vperm.xlu1 %1061, %v329_v6   ;;  %347 = vperm.xlu0 %1060, %v328_v7   ;;  %v776_v32 = vld [vmem:[%s1432_s7] sm:$0xff]  ;;  %v779_v33 = vld [vmem:[%s1432_s7 + $0x18] sm:$0xff]  ;;  %v778_v34 = vld [vmem:[%s1432_s7 + $0x10] sm:$0xff]  ;;  %s325_s26 = scalar_lea.vmem %s1425_s0, %s324_s23  ;;  %s321_s23 = sand.u32 1, %s1116_s12  }
  0x1b   : > { %v813_v35 = vld [vmem:[#allocation2] sm:$0x1]  ;;  %v459_v22 = vld [vmem:[%s1428_s3 + $0x30] sm:$0xff]  ;;  %s322_s25 = scalar_lea.vmem [#allocation3], %s321_s23  ;;  %s826_s30 = scalar_lea.sflag [#allocation4], %s321_s23 }
  0x1c   : > { %v894_v36 = vld [vmem:[%s325_s26] ss:$0 sm:$0xff]  ;;  %s838_s26 = sshll.u32 %s322_s25, 4  ;;  %s1066_s15 = sshll.u32 %s1127_s8, 4  ;;  %s1385_s26 = int_to_ptr.vmem [resolvable:$true] %s838_s26  ;;  %s1067_s15 = int_to_ptr.vmem [resolvable:$false] %s1066_s15 }
  0x1d   : > { %s1062_s10 = scalar_lea.vmem %s1385_s26, 16  ;;  %s1068_s17 = scalar_lea.vmem %s1067_s15, 32 }
  0x1e   : > { %414 = vperm.xlu1 %1061, %v392_v8   ;;  %409 = vperm.xlu0 %1060, %v391_v9   ;;  %p1063_p11 = scmp.ne.s32.totalorder %s1385_s26, %s1062_s10  ;;  %p1069_p0 = scmp.lt.s32.totalorder %s1385_s26, %s1067_s15 }
  0x1f   : > { %p1070_p1 = scmp.lt.s32.totalorder %s1068_s17, %s1062_s10 }
  0x20   : > { %p1064_p12 = pnand %p1063_p11, %p1219_p5 }
  0x21   : > { %p1071_p2 = por %p1070_p1, %p1069_p0 }
  0x22   : > { %362 = vperm.xlu1 %1061, %v331_v10   ;;  %357 = vperm.xlu0 %1060, %v330_v11   ;;  %p1065_p13 = pneg %p1064_p12 }
  0x24   : > { %p1072_p3 = pnand %p1071_p2, %p1065_p13 }
  0x26   : > { %424 = vperm.xlu1 %1061, %v394_v12   ;;  %419 = vperm.xlu0 %1060, %v393_v13  }
  0x2a   : > { %372 = vperm.xlu1 %1061, %v333_v14   ;;  %367 = vperm.xlu0 %1060, %v332_v15  }
  0x2e   : > { %434 = vperm.xlu1 %1061, %v396_v16   ;;  %429 = vperm.xlu0 %1060, %v395_v17   ;;  %v454_v17 = vld [vmem:[%s1428_s3 + $0x8] sm:$0xff] }
  0x32   : > { %476 = vperm.xlu1 %1061, %v462_v18   ;;  %471 = vperm.xlu0 %1060, %v461_v19   ;;  %v455_v18 = vld [vmem:[%s1428_s3 + $0x10] sm:$0xff]  ;;  %v456_v19 = vld [vmem:[%s1428_s3 + $0x18] sm:$0xff] }
  0x36   : > { %486 = vperm.xlu1 %1061, %v464_v20   ;;  %481 = vperm.xlu0 %1060, %v463_v21   ;;  %v457_v20 = vld [vmem:[%s1428_s3 + $0x20] sm:$0xff]  ;;  %v458_v21 = vld [vmem:[%s1428_s3 + $0x28] sm:$0xff] }
  0x3a   : > { %496 = vperm.xlu1 %1061, %v466_v23   ;;  %491 = vperm.xlu0 %1060, %v465_v24   ;;  %v460_v23 = vld [vmem:[%s1428_s3 + $0x38] sm:$0xff]  ;;  %v647_v24 = vld [vmem:[%s1430_s5] sm:$0xff] }
  0x3b   : > { %982 = vmatprep.mubr.msk.f32.mxu1 %vm509_vm0, %v647_v24 }
  0x3e   : > { %506 = vperm.xlu1 %1061, %v468_v25   ;;  %501 = vperm.xlu0 %1060, %v467_v26  }
  0x42   : > { %662 = vperm.xlu1 %1061, %v652_v27   ;;  %657 = vperm.xlu0 %1060, %v651_v28  }
  0x46   : > { %672 = vperm.xlu1 %1061, %v654_v29   ;;  %667 = vperm.xlu0 %1060, %v653_v30  }
  0x4a   : > { %787 = vperm.xlu1 %1061, %v777_v31   ;;  %782 = vperm.xlu0 %1060, %v776_v32  }
  0x4e   : > { %797 = vperm.xlu1 %1061, %v779_v33   ;;  %792 = vperm.xlu0 %1060, %v778_v34  }
  0x52   : > { %816 = vperm.xlu0 %1060, %v813_v35  }
  0x91   : > { %v400_v37 = vpop.permute.xlu1 %399  ;;  %v338_v38 = vpop.permute.xlu0 %337 }
  0x92   : > { %v381_v39 = vmul.f32 %v894_v36, %v338_v38 }
  0x94   : > { %v437_v42 = vadd.f32 %v400_v37, %v381_v39 }
  0x95   : > { %v405_v40 = vpop.permute.xlu1 %404  ;;  %v343_v41 = vpop.permute.xlu0 %342 }
  0x96   : > { %v382_v43 = vmul.f32 %v894_v36, %v343_v41  ;;  %v445_v47 = vmax.f32 %v437_v42, 0.0 }
  0x98   : > { %v438_v44 = vadd.f32 %v405_v40, %v382_v43 }
  0x99   : > { %v353_v45 = vpop.permute.xlu1 %352  ;;  %v348_v46 = vpop.permute.xlu0 %347 }
  0x9a   : > { %v446_v48 = vmax.f32 %v438_v44, 0.0  ;;  %v384_v49 = vmul.f32 %v894_v36, %v353_v45  ;;  %v383_v50 = vmul.f32 %v894_v36, %v348_v46 }
  0x9c   : > { %v988_v51 = vpack.c.bf16 %v446_v48, %v445_v47 }
  0x9d   : > { %v415_v52 = vpop.permute.xlu1 %414  ;;  %v410_v53 = vpop.permute.xlu0 %409 }
  0x9e   : > { %v440_v54 = vadd.f32 %v415_v52, %v384_v49  ;;  %v439_v55 = vadd.f32 %v410_v53, %v383_v50  ;;  %989 = vmatprep.subr.bf16.mxu0 %v988_v51 }
  0x9f   : > { %991 = vmatpush3.bf16.msra.mxu0 %v988_v51 }
  0xa0   : > { %v448_v56 = vmax.f32 %v440_v54, 0.0  ;;  %v447_v57 = vmax.f32 %v439_v55, 0.0 }
  0xa1   : > { %v363_v58 = vpop.permute.xlu1 %362  ;;  %v358_v59 = vpop.permute.xlu0 %357 }
  0xa2   : > { %v992_v60 = vpack.c.bf16 %v448_v56, %v447_v57  ;;  %v386_v61 = vmul.f32 %v894_v36, %v363_v58  ;;  %v385_v62 = vmul.f32 %v894_v36, %v358_v59 }
  0xa4   : > { %993 = vmatprep.subr.bf16.mxu0 %v992_v60 }
  0xa5   : > { %v425_v63 = vpop.permute.xlu1 %424  ;;  %v420_v0 = vpop.permute.xlu0 %419  ;;  %995 = vmatpush3.bf16.msra.mxu0 %v992_v60 }
  0xa6   : > { %v442_v1 = vadd.f32 %v425_v63, %v386_v61  ;;  %v441_v2 = vadd.f32 %v420_v0, %v385_v62  ;;  %v648_v61 = vld [vmem:[%s1430_s5 + $0x8] sm:$0xff]  ;;  %v649_v62 = vld [vmem:[%s1430_s5 + $0x10] sm:$0xff]  ;;  %v650_v63 = vld [vmem:[%s1430_s5 + $0x18] sm:$0xff] }
  0xa8   : > { %v450_v3 = vmax.f32 %v442_v1, 0.0  ;;  %v449_v4 = vmax.f32 %v441_v2, 0.0 }
  0xa9   : > { %v373_v5 = vpop.permute.xlu1 %372  ;;  %v368_v6 = vpop.permute.xlu0 %367 }
  0xaa   : > { %v996_v7 = vpack.c.bf16 %v450_v3, %v449_v4  ;;  %v388_v8 = vmul.f32 %v894_v36, %v373_v5  ;;  %v387_v9 = vmul.f32 %v894_v36, %v368_v6 }
  0xac   : > { %997 = vmatprep.subr.bf16.mxu0 %v996_v7 }
  0xad   : > { %v435_v10 = vpop.permute.xlu1 %434  ;;  %v430_v11 = vpop.permute.xlu0 %429  ;;  %999 = vmatpush3.bf16.msra.mxu0 %v996_v7 }
  0xae   : > { %v444_v12 = vadd.f32 %v435_v10, %v388_v8  ;;  %v443_v13 = vadd.f32 %v430_v11, %v387_v9 }
  0xb0   : > { %v452_v14 = vmax.f32 %v444_v12, 0.0  ;;  %v451_v15 = vmax.f32 %v443_v13, 0.0 }
  0xb1   : > { %v477_v25 = vpop.permute.xlu1 %476  ;;  %v472_v26 = vpop.permute.xlu0 %471 }
  0xb2   : > { %v1000_v16 = vpack.c.bf16 %v452_v14, %v451_v15 }
  0xb4   : > { %1001 = vmatprep.subr.bf16.mxu0 %v1000_v16 }
  0xb5   : > { %1003 = vmatpush3.bf16.msra.mxu0 %v1000_v16  ;;  %v487_v27 = vpop.permute.xlu1 %486  ;;  %v482_v29 = vpop.permute.xlu0 %481 }
  0xb8   : > { %955 = vmatmul.mubr.msk.f32.vlgmr.msra.gmra.mrb[0].mxu0 %vm509_vm0, %v454_v17 }
  0xb9   : > { %957 = vmatprep.mubr.msk.f32.mxu0 %vm509_vm0, %v455_v18  ;;  %v497_v38 = vpop.permute.xlu1 %496  ;;  %v492_v41 = vpop.permute.xlu0 %491 }
  0xbc   : > { %958 = vmatmul.mubr.msk.f32.gmra.mrb[2].mxu0 %vm509_vm0, %v456_v19 }
  0xbd   : > { %960 = vmatprep.mubr.msk.f32.mxu0 %vm509_vm0, %v457_v20  ;;  %v507_v50 = vpop.permute.xlu1 %506  ;;  %v502_v53 = vpop.permute.xlu0 %501 }
  0xc0   : > { %961 = vmatmul.mubr.msk.f32.gmra.mrb[4].mxu0 %vm509_vm0, %v458_v21 }
  0xc1   : > { %963 = vmatprep.mubr.msk.f32.mxu0 %vm509_vm0, %v459_v22  ;;  %v658_v0 = vpop.permute.xlu0 %657  ;;  %v663_v1 = vpop.permute.xlu1 %662 }
  0xc4   : > { %964 = vmatmul.mubr.msk.f32.gmra.mrb[6].mxu0 %vm509_vm0, %v460_v23 }
  0xc5   : > { %v668_v2 = vpop.permute.xlu0 %667  ;;  %v673_v3 = vpop.permute.xlu1 %672 }
  0xc9   : > { %v783_v8 = vpop.permute.xlu0 %782  ;;  %v788_v10 = vpop.permute.xlu1 %787 }
  0xcd   : > { %v793_v21 = vpop.permute.xlu0 %792  ;;  %v798_v23 = vpop.permute.xlu1 %797 }
 0x18b   : > { %v956_v28 = vpop.f32.mrb[0].mxu0 }
 0x18c   : > { %v606_v30 = vadd.f32 %v956_v28, %v477_v25  ;;  %v600_v31 = vpop.f32.mrb[1].mxu0 }
 0x18d   : > { %v601_v32 = vadd.f32 %v600_v31, %v472_v26  ;;  %v819_v26 = vlaneseq }
 0x18e   : > { %v640_v33 = vmax.f32 %v606_v30, 0.0 }
 0x18f   : > { %v639_v34 = vmax.f32 %v601_v32, 0.0  ;;  %v959_v35 = vpop.f32.mrb[2].mxu0 }
 0x190   : > { %v616_v36 = vadd.f32 %v959_v35, %v487_v27  ;;  %v610_v37 = vpop.f32.mrb[3].mxu0 }
 0x191   : > { %v611_v39 = vadd.f32 %v610_v37, %v482_v29  ;;  %v1004_v40 = vpack.c.bf16 %v640_v33, %v639_v34  ;;  %v820_v29 = vshrl.u32 %v819_v26, 7  ;;  %v817_v34 = vpop.permute.xlu0 %816 }
 0x192   : > { %v642_v42 = vmax.f32 %v616_v36, 0.0 }
 0x193   : > { %v641_v43 = vmax.f32 %v611_v39, 0.0  ;;  %v962_v44 = vpop.f32.mrb[4].mxu0  ;;  %1005 = vmatprep.subr.bf16.mxu1 %v1004_v40  ;;  %v821_v32 = vsub.s32 0, %v820_v29 }
 0x194   : > { %v626_v45 = vadd.f32 %v962_v44, %v497_v38  ;;  %v620_v46 = vpop.f32.mrb[5].mxu0  ;;  %1007 = vmatpush3.bf16.msra.mxu1 %v1004_v40 }
 0x195   : > { %v1008_v47 = vpack.c.bf16 %v642_v42, %v641_v43  ;;  %v621_v48 = vadd.f32 %v620_v46, %v492_v41  ;;  %v822_v36 = vrot.slane %v817_v34, %v821_v32 }
 0x196   : > { %v644_v49 = vmax.f32 %v626_v45, 0.0 }
 0x197   : > { %v643_v51 = vmax.f32 %v621_v48, 0.0  ;;  %v965_v52 = vpop.f32.mrb[6].mxu0  ;;  %1009 = vmatprep.subr.bf16.mxu1 %v1008_v47 }
 0x198   : > { %v636_v54 = vadd.f32 %v965_v52, %v507_v50  ;;  %v630_v55 = vpop.f32.mrb[7].mxu0  ;;  %1011 = vmatpush3.bf16.msra.mxu1 %v1008_v47 }
 0x199   : > { %v1012_v56 = vpack.c.bf16 %v644_v49, %v643_v51  ;;  %v631_v57 = vadd.f32 %v630_v55, %v502_v53 }
 0x19a   : > { %v646_v58 = vmax.f32 %v636_v54, 0.0 }
 0x19b   : > { %v645_v59 = vmax.f32 %v631_v57, 0.0  ;;  %1013 = vmatprep.subr.bf16.mxu1 %v1012_v56 }
 0x19c   : > { %1015 = vmatpush3.bf16.msra.mxu1 %v1012_v56 }
 0x19d   : > { %v1016_v60 = vpack.c.bf16 %v646_v58, %v645_v59 }
 0x19f   : > { %1017 = vmatprep.subr.bf16.mxu1 %v1016_v60 }
 0x1a0   : > { %1019 = vmatpush3.bf16.msra.mxu1 %v1016_v60 }
 0x1a3   : > { %983 = vmatmul.mubr.msk.f32.vlgmr.msra.gmra.mrb[0].mxu1 %vm509_vm0, %v648_v61 }
 0x1a4   : > { %985 = vmatprep.mubr.msk.f32.mxu1 %vm509_vm0, %v649_v62 }
 0x1a7   : > { %986 = vmatmul.mubr.msk.f32.gmra.mrb[2].mxu1 %vm509_vm0, %v650_v63 }
 0x276   : > { %v984_v4 = vpop.f32.mrb[0].mxu1 }
 0x277   : > { %v759_v5 = vadd.f32 %v984_v4, %v663_v1  ;;  %v753_v6 = vpop.f32.mrb[1].mxu1 }
 0x278   : > { %v754_v7 = vadd.f32 %v753_v6, %v658_v0 }
 0x279   : > { %v773_v9 = vmax.f32 %v759_v5, 0.0 }
 0x27a   : > { %v772_v11 = vmax.f32 %v754_v7, 0.0  ;;  %v987_v12 = vpop.f32.mrb[2].mxu1 }
 0x27b   : > { %v801_v13 = vmul.f32 %v788_v10, %v773_v9  ;;  %v769_v14 = vadd.f32 %v987_v12, %v673_v3  ;;  %v763_v15 = vpop.f32.mrb[3].mxu1 }
 0x27c   : > { %v800_v16 = vmul.f32 %v783_v8, %v772_v11  ;;  %v764_v17 = vadd.f32 %v763_v15, %v668_v2 }
 0x27d   : > { %v775_v19 = vmax.f32 %v769_v14, 0.0 }
 0x27e   : > { %v804_v18 = vadd.f32 %v801_v13, %v800_v16  ;;  %v774_v20 = vmax.f32 %v764_v17, 0.0 }
 0x27f   : > { %v803_v24 = vmul.f32 %v798_v23, %v775_v19 }
 0x280   : > { %v802_v22 = vmul.f32 %v793_v21, %v774_v20 }
 0x282   : > { %v805_v25 = vadd.f32 %v804_v18, %v802_v22 }
 0x284   : > { %v806_v27 = vadd.f32 %v805_v25, %v803_v24 }
 0x286   : > { %v807_v28 = vrot.slane %v806_v27, 4 }
 0x288   : > { %v808_v30 = vadd.f32 %v807_v28, %v806_v27 }
 0x28a   : > { %v809_v31 = vrot.slane %v808_v30, 2 }
 0x28c   : > { %v810_v33 = vadd.f32 %v809_v31, %v808_v30 }
 0x28e   : > { %v811_v35 = vrot.slane %v810_v33, 1 }
 0x290   : > { %v812_v37 = vadd.f32 %v811_v35, %v810_v33 }
 0x292   : > { %v823_v38 = vadd.f32 %v822_v36, %v812_v37 }
 0x294   : > { %824 = vst [vmem:[%s322_s25] sm:$0x1] %v823_v38 }
 0x295   : > { %1075 = shalt.err (!%p1072_p3)
}
 0x296   : > { %s1076_s18 = scalar_lea.hbm %s1383_s29, 16  ;;  %s1080_s24 = scalar_lea.hbm %s1434_s9, 32 }
 0x297   : > { %p1077_p4 = scmp.ne.s32.totalorder %s1383_s29, %s1076_s18  ;;  %p1081_p9 = scmp.lt.u32.totalorder %s1383_s29, %s1434_s9 }
 0x298   : > { %p1082_p10 = scmp.lt.u32.totalorder %s1080_s24, %s1076_s18  ;;  %p1084_p12 = scmp.lt.u32.totalorder %s1076_s18, %s1383_s29 }
 0x299   : > { %p1078_p7 = pnand %p1077_p4, %p1219_p5 }
 0x29a   : > { %p1083_p11 = por %p1082_p10, %p1081_p9 }
 0x29b   : > { %p1079_p8 = pneg %p1078_p7 }
 0x29c   : > { %p1085_p13 = por %p1084_p12, %p1083_p11 }
 0x29e   : > { %p1086_p0 = pnand %p1085_p13, %p1079_p8 }
 0x2a0   : > { %1089 = shalt.err (!%p1086_p0)
}
 0x2a1   : > { %1020 = dma.vmem_to_hbm [thread:$0]  (%p1219_p5), %s1385_s26, 16, %s1383_s29, %s826_s30  }
 0x2a2 PF: > { %p1026_p1 = scmp.ge.s32.totalorder %s1124_s14, 2  ;;  %s850_s28 = sand.u32 1, %s1112_s11  }
 0x2a3   : > { %s851_s10 = scalar_lea.sflag [#allocation4], %s850_s28 }
 0x2a4   : > { %p1023_p2 = pnand %p1026_p1, %p1223_p6 }
 0x2a6   : > { %1107 = dma.done.wait (!%p1023_p2), %s851_s10, 16  }
 0x2a7   : > { %1109 = vsyncadd (!%p1023_p2), %s851_s10, 4294967280  ;;  %p21_p3 = scmp.ge.s32.totalorder %s1206_s16, 4   ;;  %s1437_s11 = smov %s1116_s12 }
 0x2a8   : > { %s1438_s12 = smov %s1120_s13  ;;  %s1439_s13 = smov %s1217_s19 }
 0x2a9   : > { %s1440_s14 = smov %s1206_s16  ;;  %23 = sbr.rel (!%p21_p3) target bundleno = 6 (0x6), region = 91 }
 0x2b0   :  { %855 = vsyncpa [#allocation4], 1 }
 0x2b1   :  { %857 = vsyncpa [#allocation4 + $0x1], 1 }

</bundles_post_ra>
